<compile_context>
chip_gen: v7x
topology: tpu7x:2x2x1
jax: 0.10.0
libtpu: 0.0.40
codegen_flags: <defaults>
</compile_context>

<pallas_src>
import jax
import jax.numpy as jnp
from jax.experimental import pallas as pl
from jax.experimental.pallas import tpu as pltpu

MID_SIZE = 2048  # self.mid_size in the PyTorch module


def _round_up(x, m):
    return ((x + m - 1) // m) * m


# -----------------------------------------------------------------------------
# Kernel body (shared by the untiled small-batch path and the batch-tiled path)
# -----------------------------------------------------------------------------
def _decoder_kernel(x_ref, w1_ref, b1_ref, w2_ref, b2_ref, o_ref):
    # In-kernel cast of x to the MXU compute dtype (bf16 by default); x stays
    # f32 in HBM so no separate wrapper-side astype pass is needed.
    x = x_ref[...].astype(w1_ref.dtype)
    h = jnp.dot(x, w1_ref[...], preferred_element_type=jnp.float32)
    h = jnp.maximum(h + b1_ref[...], 0.0)                       # bias (1, mid) broadcasts
    o = jnp.dot(h.astype(w2_ref.dtype), w2_ref[...],
                preferred_element_type=jnp.float32)
    o_ref[...] = jnp.maximum(o + b2_ref[...], 0.0).astype(o_ref.dtype)


# -----------------------------------------------------------------------------
# One-time parameter preparation (cast / pad weights ONCE, not per forward call)
# -----------------------------------------------------------------------------
def prepare_decoder_params(w1, b1, w2, b2, *, compute_dtype=jnp.bfloat16):
    """w1: [in, mid], b1: [1|_, mid], w2: [mid, out], b2: [1|_, out] (pre-transposed).

    Returns bf16 weights, f32 biases, with the output-feature axis padded to a
    multiple of 128 lanes (lane-dense stores). Call once at init time.
    """
    in_size, mid = w1.shape
    mid_w, out_size = w2.shape
    assert mid == MID_SIZE and mid_w == mid

    w1c = w1.astype(compute_dtype)
    w2c = w2.astype(compute_dtype)
    b1f = b1.reshape(1, mid).astype(jnp.float32)
    b2f = b2.reshape(1, out_size).astype(jnp.float32)

    out_p = _round_up(max(out_size, 128), 128)   # stop at 128; no over-padding
    if out_p != out_size:
        w2c = jnp.pad(w2c, ((0, 0), (0, out_p - out_size)))
        b2f = jnp.pad(b2f, ((0, 0), (0, out_p - out_size)))

    return {"w1": w1c, "b1": b1f, "w2": w2c, "b2": b2f,
            "out_size": out_size, "out_p": out_p, "in_size": in_size}


# -----------------------------------------------------------------------------
# Forward wrapper
# -----------------------------------------------------------------------------
def decoder_forward(x, params, *, block_m=512, small_batch_cutoff=128):
    """x: [B, input_size] (f32); params from prepare_decoder_params."""
    B, in_size = x.shape
    assert in_size == params["in_size"]
    w1c, b1f, w2c, b2f = params["w1"], params["b1"], params["w2"], params["b2"]
    out_size, out_p = params["out_size"], params["out_p"]
    out_dtype = x.dtype

    if B <= small_batch_cutoff:
        # Tiny batch: launch/latency bound -> single untiled invocation, zero
        # grid/pipeline overhead; everything (< 1.5 MiB) resident in VMEM.
        bp = _round_up(B, 16)
        xp = jnp.pad(x, ((0, bp - B), (0, 0))) if bp != B else x
        out = pl.pallas_call(
            _decoder_kernel,
            out_shape=jax.ShapeDtypeStruct((bp, out_p), out_dtype),
        )(xp, w1c, b1f, w2c, b2f)
        return out[:B, :out_size]

    # Batch-tiled path: grid over batch only (weights fully VMEM-resident via
    # constant-index BlockSpecs). Guarantee >= 2 tiles so both v7x TensorCores
    # are used when the batch axis is sharded ("parallel"); harmless elsewhere.
    block_m = min(block_m, _round_up(pl.cdiv(B, 2), 16))
    bp = _round_up(B, block_m)
    xp = jnp.pad(x, ((0, bp - B), (0, 0))) if bp != B else x
    grid = (bp // block_m,)

    out = pl.pallas_call(
        _decoder_kernel,
        out_shape=jax.ShapeDtypeStruct((bp, out_p), out_dtype),
        grid_spec=pltpu.PrefetchScalarGridSpec(
            num_scalar_prefetch=0,
            grid=grid,
            in_specs=[
                pl.BlockSpec((block_m, in_size), lambda i: (i, 0)),   # x tile (streamed)
                pl.BlockSpec((in_size, MID_SIZE), lambda i: (0, 0)),  # W1 (resident)
                pl.BlockSpec((1, MID_SIZE), lambda i: (0, 0)),        # b1 (resident)
                pl.BlockSpec((MID_SIZE, out_p), lambda i: (0, 0)),    # W2 (resident)
                pl.BlockSpec((1, out_p), lambda i: (0, 0)),           # b2 (resident)
            ],
            out_specs=pl.BlockSpec((block_m, out_p), lambda i: (i, 0)),
        ),
        compiler_params=pltpu.CompilerParams(
            dimension_semantics=("parallel",),
        ),
    )(xp, w1c, b1f, w2c, b2f)
    return out[:B, :out_size]


# -----------------------------------------------------------------------------
# Params / reference
# -----------------------------------------------------------------------------
def init_decoder_params(key, input_size, output_size, dtype=jnp.float32):
    """Mimics nn.Linear's uniform(-1/sqrt(fan_in), 1/sqrt(fan_in)); weights pre-transposed [in,out]."""
    k1, k2, k3, k4 = jax.random.split(key, 4)
    bound1 = 1.0 / (input_size ** 0.5)
    bound2 = 1.0 / (MID_SIZE ** 0.5)
    w1 = jax.random.uniform(k1, (input_size, MID_SIZE), dtype, -bound1, bound1)
    b1 = jax.random.uniform(k2, (1, MID_SIZE), dtype, -bound1, bound1)
    w2 = jax.random.uniform(k3, (MID_SIZE, output_size), dtype, -bound2, bound2)
    b2 = jax.random.uniform(k4, (1, output_size), dtype, -bound2, bound2)
    return w1, b1, w2, b2


def decoder_ref(x, w1, b1, w2, b2, compute_dtype=jnp.bfloat16):
    """Pure-JAX reference with the same bf16 operand rounding / f32 accumulation."""
    cd = compute_dtype
    h = jnp.dot(x.astype(cd), w1.astype(cd), preferred_element_type=jnp.float32)
    h = jnp.maximum(h + b1.astype(jnp.float32), 0.0)
    o = jnp.dot(h.astype(cd), w2.astype(cd), preferred_element_type=jnp.float32)
    return jnp.maximum(o + b2.astype(jnp.float32), 0.0)


if __name__ == "__main__":
    key = jax.random.PRNGKey(0)
    kx1, kx2, kp = jax.random.split(key, 3)

    input_size = 64    # hidden_size*2 fed to CMDTrans_model.image_decoder (hidden_size=32)
    output_size = 32   # raw_size (kept small)

    w1, b1, w2, b2 = init_decoder_params(kp, input_size, output_size)
    params = prepare_decoder_params(w1, b1, w2, b2)   # one-time bf16 cast + lane pad

    # --- tiny batch: exercises the untiled single-invocation path ---
    x_small = jax.random.normal(kx1, (8, input_size), jnp.float32)
    out_small = jax.block_until_ready(decoder_forward(x_small, params))
    ref_small = decoder_ref(x_small, w1, b1, w2, b2)
    assert out_small.shape == (8, output_size)
    assert jnp.allclose(out_small, ref_small, atol=1e-2, rtol=1e-2)

    # --- larger batch: exercises the batch-tiled path (>= 2 tiles, weights resident) ---
    x_large = jax.random.normal(kx2, (256, input_size), jnp.float32)
    out_large = jax.block_until_ready(decoder_forward(x_large, params))
    ref_large = decoder_ref(x_large, w1, b1, w2, b2)
    assert out_large.shape == (256, output_size)
    assert jnp.allclose(out_large, ref_large, atol=1e-2, rtol=1e-2)

    print("KERNEL_OK")
</pallas_src>

<mosaic_0001>
module attributes {stable_mosaic.version = 11 : i64} {
  func.func @_decoder_kernel(%arg0: memref<16x64xf32, #tpu.memory_space<vmem>>, %arg1: memref<64x2048xbf16, #tpu.memory_space<vmem>>, %arg2: memref<1x2048xf32, #tpu.memory_space<vmem>>, %arg3: memref<2048x128xbf16, #tpu.memory_space<vmem>>, %arg4: memref<1x128xf32, #tpu.memory_space<vmem>>, %arg5: memref<16x128xf32, #tpu.memory_space<vmem>>) attributes {dimension_semantics = [], scalar_prefetch = 0 : i64, scratch_operands = 0 : i64, tpu.core_type = #tpu.core_type<tc>} {
    %c0 = arith.constant 0 : index
    %c0_0 = arith.constant 0 : index
    %0 = vector.load %arg0[%c0, %c0_0] : memref<16x64xf32, #tpu.memory_space<vmem>>, vector<16x64xf32>
    %1 = arith.truncf %0 : vector<16x64xf32> to vector<16x64xbf16>
    %c0_1 = arith.constant 0 : index
    %c0_2 = arith.constant 0 : index
    %2 = vector.load %arg1[%c0_1, %c0_2] : memref<64x2048xbf16, #tpu.memory_space<vmem>>, vector<64x2048xbf16>
    %cst = arith.constant dense<0.000000e+00> : vector<16x2048xf32>
    %3 = tpu.matmul %1, %2, %cst {dimension_numbers = #tpu.dot_dimension_numbers<[1], [0], [0], [1], [0, 0, 1, 1], [], []>} : vector<16x64xbf16>, vector<64x2048xbf16>, vector<16x2048xf32> -> vector<16x2048xf32>
    %c0_3 = arith.constant 0 : index
    %c0_4 = arith.constant 0 : index
    %4 = vector.load %arg2[%c0_3, %c0_4] : memref<1x2048xf32, #tpu.memory_space<vmem>>, vector<1x2048xf32>
    %5 = vector.broadcast %4 : vector<1x2048xf32> to vector<16x2048xf32>
    %6 = arith.addf %3, %5 : vector<16x2048xf32>
    %cst_5 = arith.constant 0.000000e+00 : f32
    %7 = vector.broadcast %cst_5 : f32 to vector<16x2048xf32>
    %8 = arith.maximumf %6, %7 : vector<16x2048xf32>
    %9 = arith.truncf %8 : vector<16x2048xf32> to vector<16x2048xbf16>
    %c0_6 = arith.constant 0 : index
    %c0_7 = arith.constant 0 : index
    %10 = vector.load %arg3[%c0_6, %c0_7] : memref<2048x128xbf16, #tpu.memory_space<vmem>>, vector<2048x128xbf16>
    %cst_8 = arith.constant dense<0.000000e+00> : vector<16x128xf32>
    %11 = tpu.matmul %9, %10, %cst_8 {dimension_numbers = #tpu.dot_dimension_numbers<[1], [0], [0], [1], [0, 0, 1, 1], [], []>} : vector<16x2048xbf16>, vector<2048x128xbf16>, vector<16x128xf32> -> vector<16x128xf32>
    %c0_9 = arith.constant 0 : index
    %c0_10 = arith.constant 0 : index
    %12 = vector.load %arg4[%c0_9, %c0_10] : memref<1x128xf32, #tpu.memory_space<vmem>>, vector<1x128xf32>
    %13 = vector.broadcast %12 : vector<1x128xf32> to vector<16x128xf32>
    %14 = arith.addf %11, %13 : vector<16x128xf32>
    %cst_11 = arith.constant 0.000000e+00 : f32
    %15 = vector.broadcast %cst_11 : f32 to vector<16x128xf32>
    %16 = arith.maximumf %14, %15 : vector<16x128xf32>
    %c0_12 = arith.constant 0 : index
    %c0_13 = arith.constant 0 : index
    %17 = vector.load %arg5[%c0_12, %c0_13] : memref<16x128xf32, #tpu.memory_space<vmem>>, vector<16x128xf32>
    tpu.vector_store %arg5[%c0_12, %c0_13], %16 {strides = array<i32>} : memref<16x128xf32, #tpu.memory_space<vmem>>, vector<16x128xf32>,
    return
  }
}

</mosaic_0001>

<bundles_post_ra>
// kernel: tpu_custom_call.1
= control target key start
LH: loop header
LB: loop body
LE: loop exit
PB: predicated region body
PF: predicated region fallthrough
CT: control target
= control target key end

     0   :  { %10 = vsyncpa [#allocation3], 0  ;;  %s3174_s0 = inlined_call_operand.hbm [shape: f32[16,64], index: 0, kind: input, shape index: {}]   ;;  %s3175_s1 = inlined_call_operand.hbm [shape: bf16[64,2048], index: 1, kind: input, shape index: {}]   ;;  %s3176_s2 = inlined_call_operand.hbm [shape: f32[1,2048], index: 2, kind: input, shape index: {}]   ;;  %s3177_s3 = inlined_call_operand.hbm [shape: bf16[2048,128], index: 3, kind: input, shape index: {}]   ;;  %s3178_s4 = inlined_call_operand.vmem [shape: f32[1,128], index: 4, kind: input, shape index: {}]   ;;  %s3179_s5 = inlined_call_operand.hbm [shape: f32[16,128], index: 5, kind: output, shape index: {}]  }
   0x1   :  { %11 = vsyncpa [#allocation6], 0 }
   0x2   :  { %12 = vsyncpa [#allocation9], 0 }
   0x3   :  { %13 = vsyncpa [#allocation4], 0  ;;  %s2958_s18 = smov [#allocation5]   ;;  %s2840_s22 = scalar_lea.hbm %s3175_s1, 8192 }
   0x4   :  { %s31_s19 = sshll.u32 %s2958_s18, 4  ;;  %p2841_p0 = scmp.ne.s32.totalorder %s3175_s1, %s2840_s22  ;;  %s32_s19 = int_to_ptr.vmem [resolvable:$true] %s31_s19 }
   0x5   :  { %p2844_p1 = scmp.lt.u32.totalorder %s2840_s22, %s3175_s1 }
   0x7   :  { %p2846_p2 = pnand %p2844_p1, %p2841_p0 }
   0x9   :  { %2849 = shalt.err (!%p2846_p2)
}
   0xa   :  { %s2850_s27 = scalar_lea.vmem %s32_s19, 8192  ;;  %p2855_p4 = scmp.lt.s32.totalorder %s32_s19, %s32_s19 }
   0xb   :  { %p2851_p3 = scmp.ne.s32.totalorder %s32_s19, %s2850_s27  ;;  %p2856_p5 = scmp.lt.s32.totalorder %s2850_s27, %s2850_s27 }
   0xd   :  { %p2857_p6 = por %p2856_p5, %p2855_p4 }
   0xf   :  { %p2858_p7 = pnand %p2857_p6, %p2851_p3 }
  0x11   :  { %2861 = shalt.err (!%p2858_p7)
}
  0x12   :  { %s2959_s28 = smov 1024   ;;  %s2960_s29 = smov 64  }
  0x13   :  { %37 = dma.hbm_to_vmem [thread:$0]  %s3175_s1, 8192, %s32_s19, [#allocation6], %s2959_s28, %s2959_s28, %s2960_s29  }
  0x14   :  { %s2961_s7 = smov [#allocation2]   ;;  %s2862_s11 = scalar_lea.hbm %s3174_s0, 256 }
  0x15   :  { %s19_s8 = sshll.u32 %s2961_s7, 4  ;;  %p2863_p8 = scmp.ne.s32.totalorder %s3174_s0, %s2862_s11  ;;  %s20_s8 = int_to_ptr.vmem [resolvable:$true] %s19_s8 }
  0x16   :  { %p2866_p9 = scmp.lt.u32.totalorder %s2862_s11, %s3174_s0 }
  0x18   :  { %p2868_p10 = pnand %p2866_p9, %p2863_p8 }
  0x1a   :  { %2871 = shalt.err (!%p2868_p10)
}
  0x1b   :  { %s2872_s16 = scalar_lea.vmem %s20_s8, 256  ;;  %p2877_p12 = scmp.lt.s32.totalorder %s20_s8, %s20_s8 }
  0x1c   :  { %p2873_p11 = scmp.ne.s32.totalorder %s20_s8, %s2872_s16  ;;  %p2878_p13 = scmp.lt.s32.totalorder %s2872_s16, %s2872_s16 }
  0x1e   :  { %p2879_p0 = por %p2878_p13, %p2877_p12 }
  0x20   :  { %p2880_p1 = pnand %p2879_p0, %p2873_p11 }
  0x22   :  { %2883 = shalt.err (!%p2880_p1)
}
  0x23   :  { %s2962_s1 = smov 128   ;;  %s2963_s17 = smov 8  }
  0x24   :  { %25 = dma.hbm_to_vmem [thread:$0]  %s3174_s0, 256, %s20_s8, [#allocation3], %s2962_s1, %s2962_s1, %s2963_s17  }
  0x25   :  { %s2964_s20 = smov [#allocation7]   ;;  %s2965_s22 = smov [#allocation8]  }
  0x26   :  { %s44_s21 = sshll.u32 %s2964_s20, 4  ;;  %s53_s23 = sshll.u32 %s2965_s22, 4  ;;  %s45_s21 = int_to_ptr.vmem [resolvable:$true] %s44_s21  ;;  %s3027_s23 = int_to_ptr.vmem [resolvable:$true] %s53_s23 }
  0x27   :  { %s2884_s26 = scalar_lea.hbm %s3176_s2, 256 }
  0x28   :  { %p2885_p2 = scmp.ne.s32.totalorder %s3176_s2, %s2884_s26  ;;  %p2888_p3 = scmp.lt.u32.totalorder %s2884_s26, %s3176_s2 }
  0x2a   :  { %p2890_p4 = pnand %p2888_p3, %p2885_p2 }
  0x2c   :  { %2893 = shalt.err (!%p2890_p4)
}
  0x2d   :  { %s2894_s0 = scalar_lea.vmem %s45_s21, 256  ;;  %p2899_p6 = scmp.lt.s32.totalorder %s45_s21, %s45_s21 }
  0x2e   :  { %p2895_p5 = scmp.ne.s32.totalorder %s45_s21, %s2894_s0  ;;  %p2900_p7 = scmp.lt.s32.totalorder %s2894_s0, %s2894_s0 }
  0x30   :  { %p2901_p8 = por %p2900_p7, %p2899_p6 }
  0x32   :  { %p2902_p9 = pnand %p2901_p8, %p2895_p5 }
  0x34   :  { %2905 = shalt.err (!%p2902_p9)
}
  0x35   :  { %47 = dma.hbm_to_vmem [thread:$0]  %s3176_s2, 256, %s45_s21, [#allocation6]  }
  0x36   :  { %s2906_s11 = scalar_lea.hbm %s3177_s3, 16384 }
  0x37   :  { %p2907_p10 = scmp.ne.s32.totalorder %s3177_s3, %s2906_s11  ;;  %p2910_p11 = scmp.lt.u32.totalorder %s2906_s11, %s3177_s3 }
  0x39   :  { %p2912_p12 = pnand %p2910_p11, %p2907_p10 }
  0x3b   :  { %2915 = shalt.err (!%p2912_p12)
}
  0x3c   :  { %s2916_s16 = scalar_lea.vmem %s3027_s23, 16384  ;;  %p2921_p0 = scmp.lt.s32.totalorder %s3027_s23, %s3027_s23 }
  0x3d   :  { %p2917_p13 = scmp.ne.s32.totalorder %s3027_s23, %s2916_s16  ;;  %p2922_p1 = scmp.lt.s32.totalorder %s2916_s16, %s2916_s16 }
  0x3f   :  { %p2923_p2 = por %p2922_p1, %p2921_p0 }
  0x41   :  { %p2924_p3 = pnand %p2923_p2, %p2917_p13 }
  0x43   :  { %2927 = shalt.err (!%p2924_p3)
}
  0x44   :  { %s2966_s2 = smov 4  }
  0x45   :  { %59 = dma.hbm_to_vmem [thread:$0]  %s3177_s3, 16384, %s3027_s23, [#allocation9], %s2960_s29, %s2960_s29, %s2966_s2  }
  0x46   :  { %2950 = dma.done.wait [#allocation3], 256  }
  0x47   :  { %2951 = vsyncadd [#allocation3], 4294967040 }
  0x48   :  { %2952 = dma.done.wait [#allocation6], 8448  }
  0x49   :  { %2953 = vsyncadd [#allocation6], 4294958848 }
  0x4a   :  { %2954 = dma.done.wait [#allocation9], 16384  }
  0x4b   :  { %2955 = vsyncadd [#allocation9], 4294950912  ;;  %v2967_v0 = vmov 0   ;;  %v78_v1 = vld [vmem:[#allocation5] sm:$0xff]  ;;  %v79_v3 = vld [vmem:[#allocation5 + $0x8] sm:$0xff]  ;;  %vm546_vm0 = vcmask 523264  }
  0x4c   :  { %582 = vmatprep.mubr.bf16.mxu0 %v2967_v0  ;;  %625 = vmatprep.mubr.bf16.mxu1 %v2967_v0  ;;  %v86_v2 = vld [vmem:[#allocation5 + $0x40] sm:$0xff]  ;;  %v87_v5 = vld [vmem:[#allocation5 + $0x48] sm:$0xff]  ;;  %v80_v31 = vld [vmem:[#allocation5 + $0x10] sm:$0xff] }
  0x4d   :  { %v2325_v4 = vcombine.high %v78_v1, %v86_v2  ;;  %v2324_v6 = vcombine.low %v78_v1, %v86_v2  ;;  %v94_v7 = vld [vmem:[#allocation5 + $0x80] sm:$0xff]  ;;  %v2327_v9 = vcombine.high %v79_v3, %v87_v5  ;;  %v2326_v10 = vcombine.low %v79_v3, %v87_v5  ;;  %v95_v12 = vld [vmem:[#allocation5 + $0x88] sm:$0xff]  ;;  %v88_v32 = vld [vmem:[#allocation5 + $0x50] sm:$0xff] }
  0x4e   :  { %v102_v8 = vld [vmem:[#allocation5 + $0xc0] sm:$0xff]  ;;  %v103_v13 = vld [vmem:[#allocation5 + $0xc8] sm:$0xff]  ;;  %v81_v33 = vld [vmem:[#allocation5 + $0x18] sm:$0xff]  ;;  %v2329_v39 = vcombine.high %v80_v31, %v88_v32  ;;  %v2328_v46 = vcombine.low %v80_v31, %v88_v32 }
  0x4f   :  { %v2341_v11 = vcombine.high %v94_v7, %v102_v8  ;;  %v110_v14 = vld [vmem:[#allocation5 + $0x100] sm:$0xff]  ;;  %550 = vmatprep.subr.bf16.mxu0 %v2325_v4  ;;  %v2343_v15 = vcombine.high %v95_v12, %v103_v13  ;;  %v111_v17 = vld [vmem:[#allocation5 + $0x108] sm:$0xff]  ;;  %593 = vmatprep.subr.bf16.mxu1 %v2327_v9  ;;  %v2340_v19 = vcombine.low %v94_v7, %v102_v8  ;;  %v89_v34 = vld [vmem:[#allocation5 + $0x58] sm:$0xff] }
  0x50   :  { %v118_v16 = vld [vmem:[#allocation5 + $0x140] sm:$0xff]  ;;  %v119_v18 = vld [vmem:[#allocation5 + $0x148] sm:$0xff]  ;;  %551 = vmatpush1.bf16.msra.mxu0 %v2324_v6  ;;  %594 = vmatpush1.bf16.msra.mxu1 %v2326_v10  ;;  %v2342_v20 = vcombine.low %v95_v12, %v103_v13  ;;  %v75_v36 = vld [vmem:[#allocation2] sm:$0xff]  ;;  %v2331_v40 = vcombine.high %v81_v33, %v89_v34  ;;  %v2330_v47 = vcombine.low %v81_v33, %v89_v34 }
  0x51   :  { %552 = vmatprep.subr.bf16.mxu0 %v2341_v11  ;;  %v2357_v21 = vcombine.high %v110_v14, %v118_v16  ;;  %595 = vmatprep.subr.bf16.mxu1 %v2343_v15  ;;  %v2359_v22 = vcombine.high %v111_v17, %v119_v18  ;;  %v126_v23 = vld [vmem:[#allocation5 + $0x180] sm:$0xff]  ;;  %v127_v25 = vld [vmem:[#allocation5 + $0x188] sm:$0xff]  ;;  %v2356_v27 = vcombine.low %v110_v14, %v118_v16  ;;  %v76_v37 = vld [vmem:[#allocation2 + $0x8] sm:$0xff] }
  0x52   :  { %v134_v24 = vld [vmem:[#allocation5 + $0x1c0] sm:$0xff]  ;;  %v135_v26 = vld [vmem:[#allocation5 + $0x1c8] sm:$0xff]  ;;  %v2358_v28 = vcombine.low %v111_v17, %v119_v18  ;;  %v96_v41 = vld [vmem:[#allocation5 + $0x90] sm:$0xff]  ;;  %v3062_v43 = vpack.c.bf16 %v76_v37, %v75_v36 }
  0x53   :  { %v2373_v29 = vcombine.high %v126_v23, %v134_v24  ;;  %v2375_v30 = vcombine.high %v127_v25, %v135_v26  ;;  %v2372_v35 = vcombine.low %v126_v23, %v134_v24  ;;  %v2374_v38 = vcombine.low %v127_v25, %v135_v26  ;;  %v104_v42 = vld [vmem:[#allocation5 + $0xd0] sm:$0xff]  ;;  %v97_v44 = vld [vmem:[#allocation5 + $0x98] sm:$0xff]  ;;  %v82_v63 = vld [vmem:[#allocation5 + $0x20] sm:$0xff] }
  0x54   :  { %553 = vmatpush1.bf16.msra.mxu0 %v2340_v19  ;;  %596 = vmatpush1.bf16.msra.mxu1 %v2342_v20  ;;  %v105_v45 = vld [vmem:[#allocation5 + $0xd8] sm:$0xff]  ;;  %v2345_v48 = vcombine.high %v96_v41, %v104_v42  ;;  %v112_v50 = vld [vmem:[#allocation5 + $0x110] sm:$0xff]  ;;  %v2344_v54 = vcombine.low %v96_v41, %v104_v42  ;;  %v90_v3 = vld [vmem:[#allocation5 + $0x60] sm:$0xff] }
  0x55   :  { %554 = vmatprep.subr.bf16.mxu0 %v2357_v21  ;;  %597 = vmatprep.subr.bf16.mxu1 %v2359_v22  ;;  %v2347_v49 = vcombine.high %v97_v44, %v105_v45  ;;  %v120_v51 = vld [vmem:[#allocation5 + $0x150] sm:$0xff]  ;;  %v113_v52 = vld [vmem:[#allocation5 + $0x118] sm:$0xff]  ;;  %v2346_v55 = vcombine.low %v97_v44, %v105_v45  ;;  %v83_v5 = vld [vmem:[#allocation5 + $0x28] sm:$0xff]  ;;  %v2333_v10 = vcombine.high %v82_v63, %v90_v3 }
  0x56   :  { %v121_v53 = vld [vmem:[#allocation5 + $0x158] sm:$0xff]  ;;  %v2361_v56 = vcombine.high %v112_v50, %v120_v51  ;;  %v128_v57 = vld [vmem:[#allocation5 + $0x190] sm:$0xff]  ;;  %v2360_v62 = vcombine.low %v112_v50, %v120_v51  ;;  %v91_v6 = vld [vmem:[#allocation5 + $0x68] sm:$0xff]  ;;  %v2332_v15 = vcombine.low %v82_v63, %v90_v3 }
  0x57   :  { %v136_v58 = vld [vmem:[#allocation5 + $0x1d0] sm:$0xff]  ;;  %v2363_v59 = vcombine.high %v113_v52, %v121_v53  ;;  %v129_v60 = vld [vmem:[#allocation5 + $0x198] sm:$0xff]  ;;  %v2362_v1 = vcombine.low %v113_v52, %v121_v53  ;;  %v98_v8 = vld [vmem:[#allocation5 + $0xa0] sm:$0xff]  ;;  %v2335_v12 = vcombine.high %v83_v5, %v91_v6  ;;  %v2334_v17 = vcombine.low %v83_v5, %v91_v6 }
  0x58   :  { %555 = vmatpush1.bf16.msra.mxu0 %v2356_v27  ;;  %598 = vmatpush1.bf16.msra.mxu1 %v2358_v28  ;;  %v137_v61 = vld [vmem:[#allocation5 + $0x1d8] sm:$0xff]  ;;  %v2377_v2 = vcombine.high %v128_v57, %v136_v58  ;;  %v2376_v7 = vcombine.low %v128_v57, %v136_v58  ;;  %v106_v11 = vld [vmem:[#allocation5 + $0xe0] sm:$0xff]  ;;  %v99_v13 = vld [vmem:[#allocation5 + $0xa8] sm:$0xff] }
  0x59   :  { %556 = vmatprep.subr.bf16.mxu0 %v2373_v29  ;;  %599 = vmatprep.subr.bf16.mxu1 %v2375_v30  ;;  %v2379_v4 = vcombine.high %v129_v60, %v137_v61  ;;  %v2378_v9 = vcombine.low %v129_v60, %v137_v61  ;;  %v107_v14 = vld [vmem:[#allocation5 + $0xe8] sm:$0xff]  ;;  %v114_v16 = vld [vmem:[#allocation5 + $0x120] sm:$0xff]  ;;  %v2349_v18 = vcombine.high %v98_v8, %v106_v11  ;;  %v84_v32 = vld [vmem:[#allocation5 + $0x30] sm:$0xff] }
  0x5a   :  { %v122_v19 = vld [vmem:[#allocation5 + $0x160] sm:$0xff]  ;;  %v2351_v20 = vcombine.high %v99_v13, %v107_v14  ;;  %v115_v21 = vld [vmem:[#allocation5 + $0x128] sm:$0xff]  ;;  %v2348_v23 = vcombine.low %v98_v8, %v106_v11  ;;  %v2350_v25 = vcombine.low %v99_v13, %v107_v14  ;;  %v85_v37 = vld [vmem:[#allocation5 + $0x38] sm:$0xff] }
  0x5b   :  { %v123_v22 = vld [vmem:[#allocation5 + $0x168] sm:$0xff]  ;;  %v130_v24 = vld [vmem:[#allocation5 + $0x1a0] sm:$0xff]  ;;  %v2365_v26 = vcombine.high %v114_v16, %v122_v19  ;;  %v2364_v31 = vcombine.low %v114_v16, %v122_v19  ;;  %v108_v41 = vld [vmem:[#allocation5 + $0xf0] sm:$0xff] }
  0x5c   :  { %557 = vmatpush1.bf16.msra.mxu0 %v2372_v35  ;;  %600 = vmatpush1.bf16.msra.mxu1 %v2374_v38  ;;  %v138_v27 = vld [vmem:[#allocation5 + $0x1e0] sm:$0xff]  ;;  %v2367_v28 = vcombine.high %v115_v21, %v123_v22  ;;  %v131_v29 = vld [vmem:[#allocation5 + $0x1a8] sm:$0xff]  ;;  %v2366_v33 = vcombine.low %v115_v21, %v123_v22  ;;  %v92_v35 = vld [vmem:[#allocation5 + $0x70] sm:$0xff] }
  0x5d   :  { %636 = vmatprep.subr.bf16.mxu0 %v2329_v39  ;;  %679 = vmatprep.subr.bf16.mxu1 %v2331_v40  ;;  %v139_v30 = vld [vmem:[#allocation5 + $0x1e8] sm:$0xff]  ;;  %v2381_v34 = vcombine.high %v130_v24, %v138_v27  ;;  %v93_v38 = vld [vmem:[#allocation5 + $0x78] sm:$0xff]  ;;  %v2380_v39 = vcombine.low %v130_v24, %v138_v27  ;;  %v100_v40 = vld [vmem:[#allocation5 + $0xb0] sm:$0xff]  ;;  %v2337_v44 = vcombine.high %v84_v32, %v92_v35 }
  0x5e   :  { %v2383_v36 = vcombine.high %v131_v29, %v139_v30  ;;  %v2382_v42 = vcombine.low %v131_v29, %v139_v30  ;;  %v101_v45 = vld [vmem:[#allocation5 + $0xb8] sm:$0xff]  ;;  %v124_v50 = vld [vmem:[#allocation5 + $0x170] sm:$0xff]  ;;  %v2338_v51 = vcombine.low %v85_v37, %v93_v38  ;;  %v2353_v52 = vcombine.high %v100_v40, %v108_v41  ;;  %v2720_v14 = vld [vmem:[#allocation8 + $0x50] sm:$0xff]  }
  0x5f   :  { %2388 = vmatmul.mubr.msk.bf16.vlgmr.msra.gmra.mrb[0].mxu0 %vm546_vm0, %v3062_v43  ;;  %2389 = vmatmul.mubr.msk.bf16.vlgmr.msra.gmra.mrb[0].mxu1 %vm546_vm0, %v3062_v43  ;;  %v117_v53 = vld [vmem:[#allocation5 + $0x138] sm:$0xff]  ;;  %v132_v57 = vld [vmem:[#allocation5 + $0x1b0] sm:$0xff]  ;;  %v2722_v16 = vld [vmem:[#allocation8 + $0x10] sm:$0xff]  }
  0x60   :  { %637 = vmatpush1.bf16.msra.mxu0 %v2328_v46  ;;  %680 = vmatpush1.bf16.msra.mxu1 %v2330_v47  ;;  %v2339_v46 = vcombine.high %v85_v37, %v93_v38  ;;  %v109_v47 = vld [vmem:[#allocation5 + $0xf8] sm:$0xff]  ;;  %v140_v58 = vld [vmem:[#allocation5 + $0x1f0] sm:$0xff]  ;;  %v2725_v19 = vld [vmem:[#allocation8 + $0xd8] sm:$0xff]  }
  0x61   :  { %638 = vmatprep.subr.bf16.mxu0 %v2345_v48  ;;  %681 = vmatprep.subr.bf16.mxu1 %v2347_v49  ;;  %v2336_v48 = vcombine.low %v84_v32, %v92_v35  ;;  %v116_v49 = vld [vmem:[#allocation5 + $0x130] sm:$0xff]  ;;  %v133_v61 = vld [vmem:[#allocation5 + $0x1b8] sm:$0xff]  ;;  %v2385_v3 = vcombine.high %v132_v57, %v140_v58  ;;  %v2384_v6 = vcombine.low %v132_v57, %v140_v58  ;;  %v2727_v21 = vld [vmem:[#allocation8 + $0x98] sm:$0xff]  }
  0x62   :  { %668 = vmatprep.mubr.bf16.mxu0 %v2967_v0  ;;  %711 = vmatprep.mubr.bf16.mxu1 %v2967_v0  ;;  %v2369_v60 = vcombine.high %v116_v49, %v124_v50  ;;  %v2712_v5 = vld [vmem:[#allocation8 + $0x40] sm:$0xff]   ;;  %v2716_v11 = vld [vmem:[#allocation8 + $0x48] sm:$0xff]   ;;  %v2736_v29 = vld [vmem:[#allocation8 + $0x70] sm:$0xff]  }
  0x63   :  { %v2719_v13 = vld [vmem:[#allocation8 + $0x88] sm:$0xff]   ;;  %v2728_v22 = vld [vmem:[#allocation8 + $0x60] sm:$0xff]   ;;  %v2737_v30 = vld [vmem:[#allocation8 + $0xf0] sm:$0xff]  }
  0x64   :  { %639 = vmatpush1.bf16.msra.mxu0 %v2344_v54  ;;  %682 = vmatpush1.bf16.msra.mxu1 %v2346_v55  ;;  %v125_v54 = vld [vmem:[#allocation5 + $0x178] sm:$0xff]  ;;  %v2355_v55 = vcombine.high %v101_v45, %v109_v47  ;;  %v2731_v24 = vld [vmem:[#allocation8 + $0xa0] sm:$0xff]   ;;  %v2739_v32 = vld [vmem:[#allocation8 + $0xb0] sm:$0xff]  }
  0x65   :  { %640 = vmatprep.subr.bf16.mxu0 %v2361_v56  ;;  %683 = vmatprep.subr.bf16.mxu1 %v2363_v59  ;;  %v2352_v56 = vcombine.low %v100_v40, %v108_v41  ;;  %v2354_v59 = vcombine.low %v101_v45, %v109_v47  ;;  %v2371_v63 = vcombine.high %v117_v53, %v125_v54  ;;  %v2734_v27 = vld [vmem:[#allocation8 + $0x28] sm:$0xff]   ;;  %v2742_v35 = vld [vmem:[#allocation8 + $0x38] sm:$0xff]   ;;  %v2744_v37 = vld [vmem:[#allocation8 + $0x140] sm:$0xff]  }
  0x66   :  { %v2745_v38 = vld [vmem:[#allocation8 + $0x1c0] sm:$0xff]  }
  0x68   :  { %641 = vmatpush1.bf16.msra.mxu0 %v2360_v62  ;;  %684 = vmatpush1.bf16.msra.mxu1 %v2362_v1  ;;  %v141_v62 = vld [vmem:[#allocation5 + $0x1f8] sm:$0xff]  ;;  %v2368_v1 = vcombine.low %v116_v49, %v124_v50 }
  0x69   :  { %642 = vmatprep.subr.bf16.mxu0 %v2377_v2  ;;  %685 = vmatprep.subr.bf16.mxu1 %v2379_v4  ;;  %v2370_v2 = vcombine.low %v117_v53, %v125_v54  ;;  %v2387_v4 = vcombine.high %v133_v61, %v141_v62  ;;  %v2386_v8 = vcombine.low %v133_v61, %v141_v62 }
  0x6c   :  { %643 = vmatpush1.bf16.msra.mxu0 %v2376_v7  ;;  %686 = vmatpush1.bf16.msra.mxu1 %v2378_v9  ;;  %v2713_v7 = vld [vmem:[#allocation8 + $0xc0] sm:$0xff]  }
  0x6d   :  { %722 = vmatprep.subr.bf16.mxu0 %v2333_v10  ;;  %765 = vmatprep.subr.bf16.mxu1 %v2335_v12  ;;  %v2714_v9 = vld [vmem:[#allocation8] sm:$0xff]   ;;  %v2718_v12 = vld [vmem:[#allocation8 + $0x8] sm:$0xff]  }
  0x6e   :  { %v2715_v10 = vld [vmem:[#allocation8 + $0x80] sm:$0xff]  }
  0x6f   :  { %2390 = vmatmul.mubr.msk.bf16.vlgmr.msra.gmra.mrb[4].mxu0 %vm546_vm0, %v3062_v43  ;;  %2391 = vmatmul.mubr.msk.bf16.vlgmr.msra.gmra.mrb[4].mxu1 %vm546_vm0, %v3062_v43 }
  0x70   :  { %723 = vmatpush1.bf16.msra.mxu0 %v2332_v15  ;;  %766 = vmatpush1.bf16.msra.mxu1 %v2334_v17  ;;  %v2721_v15 = vld [vmem:[#allocation8 + $0xd0] sm:$0xff]  }
  0x71   :  { %724 = vmatprep.subr.bf16.mxu0 %v2349_v18  ;;  %767 = vmatprep.subr.bf16.mxu1 %v2351_v20  ;;  %v2723_v17 = vld [vmem:[#allocation8 + $0x90] sm:$0xff]   ;;  %v2724_v18 = vld [vmem:[#allocation8 + $0x58] sm:$0xff]  }
  0x72   :  { %754 = vmatprep.mubr.bf16.mxu0 %v2967_v0  ;;  %797 = vmatprep.mubr.bf16.mxu1 %v2967_v0  ;;  %v2726_v20 = vld [vmem:[#allocation8 + $0x18] sm:$0xff]  }
  0x74   :  { %725 = vmatpush1.bf16.msra.mxu0 %v2348_v23  ;;  %768 = vmatpush1.bf16.msra.mxu1 %v2350_v25  ;;  %v2729_v23 = vld [vmem:[#allocation8 + $0xe0] sm:$0xff]   ;;  %v2732_v25 = vld [vmem:[#allocation8 + $0x68] sm:$0xff]  }
  0x75   :  { %726 = vmatprep.subr.bf16.mxu0 %v2365_v26  ;;  %769 = vmatprep.subr.bf16.mxu1 %v2367_v28  ;;  %v2733_v26 = vld [vmem:[#allocation8 + $0xe8] sm:$0xff]  }
  0x76   :  { %v2735_v28 = vld [vmem:[#allocation8 + $0xa8] sm:$0xff]  }
  0x78   :  { %727 = vmatpush1.bf16.msra.mxu0 %v2364_v31  ;;  %770 = vmatpush1.bf16.msra.mxu1 %v2366_v33  ;;  %v2738_v31 = vld [vmem:[#allocation8 + $0x30] sm:$0xff]   ;;  %v2740_v33 = vld [vmem:[#allocation8 + $0x78] sm:$0xff]  }
  0x79   :  { %728 = vmatprep.subr.bf16.mxu0 %v2381_v34  ;;  %771 = vmatprep.subr.bf16.mxu1 %v2383_v36  ;;  %v2741_v34 = vld [vmem:[#allocation8 + $0xf8] sm:$0xff]  }
  0x7a   :  { %v2743_v36 = vld [vmem:[#allocation8 + $0xb8] sm:$0xff]  }
  0x7c   :  { %729 = vmatpush1.bf16.msra.mxu0 %v2380_v39  ;;  %772 = vmatpush1.bf16.msra.mxu1 %v2382_v42  ;;  %v146_v39 = vlaneseq  ;;  %v142_v42 = vld [vmem:[#allocation7] sm:$0xff] }
  0x7d   :  { %808 = vmatprep.subr.bf16.mxu0 %v2337_v44  ;;  %851 = vmatprep.subr.bf16.mxu1 %v2339_v46 }
  0x7e   :  { %v3086_v40 = vshrl.u32 %v146_v39, 7 }
  0x7f   :  { %2392 = vmatmul.mubr.msk.bf16.vlgmr.msra.gmra.mrb[8].mxu0 %vm546_vm0, %v3062_v43  ;;  %2393 = vmatmul.mubr.msk.bf16.vlgmr.msra.gmra.mrb[8].mxu1 %vm546_vm0, %v3062_v43 }
  0x80   :  { %809 = vmatpush1.bf16.msra.mxu0 %v2336_v48  ;;  %852 = vmatpush1.bf16.msra.mxu1 %v2338_v51  ;;  %v148_v41 = vsub.s32 0, %v3086_v40  ;;  %v156_v44 = vsub.s32 2, %v3086_v40  ;;  %v152_v45 = vsub.s32 1, %v3086_v40  ;;  %v160_v46 = vsub.s32 3, %v3086_v40 }
  0x81   :  { %810 = vmatprep.subr.bf16.mxu0 %v2353_v52  ;;  %853 = vmatprep.subr.bf16.mxu1 %v2355_v55 }
  0x82   :  { %840 = vmatprep.mubr.bf16.mxu0 %v2967_v0  ;;  %883 = vmatprep.mubr.bf16.mxu1 %v2967_v0  ;;  %v2717_v0 = vld [vmem:[#allocation8 + $0xc8] sm:$0xff]   ;;  %v149_v47 = vrot.slane %v142_v42, %v148_v41  ;;  %v157_v48 = vrot.slane %v142_v42, %v156_v44  ;;  %v153_v49 = vrot.slane %v142_v42, %v152_v45 }
  0x83   :  { %v161_v50 = vrot.slane %v142_v42, %v160_v46 }
  0x84   :  { %811 = vmatpush1.bf16.msra.mxu0 %v2352_v56  ;;  %854 = vmatpush1.bf16.msra.mxu1 %v2354_v59 }
  0x85   :  { %812 = vmatprep.subr.bf16.mxu0 %v2369_v60  ;;  %855 = vmatprep.subr.bf16.mxu1 %v2371_v63 }
  0x88   :  { %813 = vmatpush1.bf16.msra.mxu0 %v2368_v1  ;;  %856 = vmatpush1.bf16.msra.mxu1 %v2370_v2 }
  0x89   :  { %814 = vmatprep.subr.bf16.mxu0 %v2385_v3  ;;  %857 = vmatprep.subr.bf16.mxu1 %v2387_v4 }
  0x8c   :  { %815 = vmatpush1.bf16.msra.mxu0 %v2384_v6  ;;  %858 = vmatpush1.bf16.msra.mxu1 %v2386_v8 }
  0x8d   :  { %2525 = vmatprep.subr.bf16.mxu0 %v2712_v5  ;;  %2547 = vmatprep.subr.bf16.mxu1 %v2713_v7 }
  0x8f   :  { %2394 = vmatmul.mubr.msk.bf16.vlgmr.msra.gmra.mrb[12].mxu0 %vm546_vm0, %v3062_v43  ;;  %2395 = vmatmul.mubr.msk.bf16.vlgmr.msra.gmra.mrb[12].mxu1 %vm546_vm0, %v3062_v43  ;;  %v2730_v43 = vld [vmem:[#allocation8 + $0x20] sm:$0xff]  }
  0x90   :  { %2526 = vmatpush3.bf16.msra.mxu0 %v2714_v9  ;;  %2548 = vmatpush3.bf16.msra.mxu1 %v2715_v10 }
  0x91   :  { %2527 = vmatprep.subr.bf16.mxu0 %v2716_v11  ;;  %2549 = vmatprep.subr.bf16.mxu1 %v2717_v0 }
  0x94   :  { %2528 = vmatpush3.bf16.msra.mxu0 %v2718_v12  ;;  %2550 = vmatpush3.bf16.msra.mxu1 %v2719_v13 }
  0x95   :  { %2529 = vmatprep.subr.bf16.mxu0 %v2720_v14  ;;  %2551 = vmatprep.subr.bf16.mxu1 %v2721_v15  ;;  %v2746_v14 = vld [vmem:[#allocation8 + $0x100] sm:$0xff]  }
  0x98   :  { %2530 = vmatpush3.bf16.msra.mxu0 %v2722_v16  ;;  %2552 = vmatpush3.bf16.msra.mxu1 %v2723_v17  ;;  %v2747_v16 = vld [vmem:[#allocation8 + $0x180] sm:$0xff]   ;;  %v2748_v17 = vld [vmem:[#allocation8 + $0x148] sm:$0xff]  }
  0x99   :  { %2531 = vmatprep.subr.bf16.mxu0 %v2724_v18  ;;  %2553 = vmatprep.subr.bf16.mxu1 %v2725_v19  ;;  %v164_v18 = vsub.s32 4, %v3086_v40  ;;  %v2749_v19 = vld [vmem:[#allocation8 + $0x1c8] sm:$0xff]  }
  0x9c   :  { %2532 = vmatpush3.bf16.msra.mxu0 %v2726_v20  ;;  %2554 = vmatpush3.bf16.msra.mxu1 %v2727_v21  ;;  %v168_v20 = vsub.s32 5, %v3086_v40  ;;  %v172_v21 = vsub.s32 6, %v3086_v40 }
  0x9d   :  { %2533 = vmatprep.subr.bf16.mxu0 %v2728_v22  ;;  %2555 = vmatprep.subr.bf16.mxu1 %v2729_v23  ;;  %v176_v22 = vsub.s32 7, %v3086_v40  ;;  %v2750_v23 = vld [vmem:[#allocation8 + $0x108] sm:$0xff]  }
  0xa0   :  { %2534 = vmatpush3.bf16.msra.mxu0 %v2730_v43  ;;  %2556 = vmatpush3.bf16.msra.mxu1 %v2731_v24  ;;  %v2751_v43 = vld [vmem:[#allocation8 + $0x188] sm:$0xff]   ;;  %v2752_v24 = vld [vmem:[#allocation8 + $0x150] sm:$0xff]  }
  0xa1   :  { %2535 = vmatprep.subr.bf16.mxu0 %v2732_v25  ;;  %2557 = vmatprep.subr.bf16.mxu1 %v2733_v26  ;;  %v165_v25 = vrot.slane %v142_v42, %v164_v18  ;;  %v2753_v26 = vld [vmem:[#allocation8 + $0x1d0] sm:$0xff]  }
  0xa4   :  { %2536 = vmatpush3.bf16.msra.mxu0 %v2734_v27  ;;  %2558 = vmatpush3.bf16.msra.mxu1 %v2735_v28  ;;  %v169_v27 = vrot.slane %v142_v42, %v168_v20  ;;  %v173_v28 = vrot.slane %v142_v42, %v172_v21 }
  0xa5   :  { %2537 = vmatprep.subr.bf16.mxu0 %v2736_v29  ;;  %2559 = vmatprep.subr.bf16.mxu1 %v2737_v30  ;;  %v177_v29 = vrot.slane %v142_v42, %v176_v22  ;;  %v2754_v30 = vld [vmem:[#allocation8 + $0x110] sm:$0xff]  }
  0xa8   :  { %2538 = vmatpush3.bf16.msra.mxu0 %v2738_v31  ;;  %2560 = vmatpush3.bf16.msra.mxu1 %v2739_v32  ;;  %v2755_v32 = vld [vmem:[#allocation8 + $0x190] sm:$0xff]  }
  0xa9   :  { %2539 = vmatprep.subr.bf16.mxu0 %v2740_v33  ;;  %2561 = vmatprep.subr.bf16.mxu1 %v2741_v34  ;;  %v2756_v33 = vld [vmem:[#allocation8 + $0x158] sm:$0xff]  }
  0xac   :  { %2540 = vmatpush3.bf16.msra.mxu0 %v2742_v35  ;;  %2562 = vmatpush3.bf16.msra.mxu1 %v2743_v36 }
  0xad   :  { %2569 = vmatprep.subr.bf16.mxu0 %v2744_v37  ;;  %2591 = vmatprep.subr.bf16.mxu1 %v2745_v38  ;;  %v2757_v37 = vld [vmem:[#allocation8 + $0x1d8] sm:$0xff]  }
 0x132   :  { %v584_v51 = vpop.f32.mrb[0].mxu0  ;;  %v627_v53 = vpop.f32.mrb[0].mxu1 }
 0x133   :  { %v585_v52 = vadd.f32 %v584_v51, %v149_v47  ;;  %v586_v54 = vpop.f32.mrb[1].mxu0  ;;  %v628_v55 = vadd.f32 %v627_v53, %v157_v48  ;;  %v629_v57 = vpop.f32.mrb[1].mxu1  ;;  %v2758_v53 = vld [vmem:[#allocation8 + $0x118] sm:$0xff]  }
 0x134   :  { %v587_v56 = vadd.f32 %v586_v54, %v153_v49  ;;  %v588_v58 = vpop.f32.mrb[2].mxu0  ;;  %v630_v59 = vadd.f32 %v629_v57, %v161_v50  ;;  %v631_v61 = vpop.f32.mrb[2].mxu1 }
 0x135   :  { %v589_v60 = vadd.f32 %v588_v58, %v149_v47  ;;  %v590_v62 = vpop.f32.mrb[3].mxu0  ;;  %v896_v63 = vmax.f32 %v628_v55, 0.0  ;;  %v632_v1 = vadd.f32 %v631_v61, %v157_v48  ;;  %v633_v3 = vpop.f32.mrb[3].mxu1  ;;  %v894_v4 = vmax.f32 %v585_v52, 0.0 }
 0x136   :  { %v591_v2 = vadd.f32 %v590_v62, %v153_v49  ;;  %v897_v5 = vmax.f32 %v630_v59, 0.0  ;;  %v634_v7 = vadd.f32 %v633_v3, %v161_v50  ;;  %v895_v8 = vmax.f32 %v587_v56, 0.0  ;;  %v2759_v59 = vld [vmem:[#allocation8 + $0x198] sm:$0xff]  }
 0x137   :  { %v910_v6 = vmax.f32 %v589_v60, 0.0  ;;  %v912_v9 = vmax.f32 %v632_v1, 0.0  ;;  %v2760_v60 = vld [vmem:[#allocation8 + $0x160] sm:$0xff]  }
 0x138   :  { %v911_v10 = vmax.f32 %v591_v2, 0.0  ;;  %v913_v0 = vmax.f32 %v634_v7, 0.0  ;;  %v2761_v1 = vld [vmem:[#allocation8 + $0x1e0] sm:$0xff]  }
 0x139   :  { %v926_v11 = vpack.c.bf16 %v910_v6, %v894_v4  ;;  %v928_v12 = vpack.c.bf16 %v912_v9, %v896_v63  ;;  %v2762_v6 = vld [vmem:[#allocation8 + $0x120] sm:$0xff]  }
 0x13a   :  { %v927_v13 = vpack.c.bf16 %v911_v10, %v895_v8  ;;  %v929_v15 = vpack.c.bf16 %v913_v0, %v897_v5  ;;  %v2763_v9 = vld [vmem:[#allocation8 + $0x1a0] sm:$0xff]   ;;  %v2764_v10 = vld [vmem:[#allocation8 + $0x168] sm:$0xff]  }
 0x13b   :  { %v2765_v0 = vld [vmem:[#allocation8 + $0x1e8] sm:$0xff]  }
 0x13c   :  { %2005 = vmatprep.mubr.bf16.mxu0 %v927_v13  ;;  %2046 = vmatprep.mubr.bf16.mxu1 %v929_v15  ;;  %v2766_v13 = vld [vmem:[#allocation8 + $0x128] sm:$0xff]   ;;  %v2768_v15 = vld [vmem:[#allocation8 + $0x170] sm:$0xff]  }
 0x13d   :  { %2006 = vmatmul.mubr.bf16.vlgmr.msra.gmra.mrb[16].mxu0 %v926_v11  ;;  %2047 = vmatmul.mubr.bf16.vlgmr.msra.gmra.mrb[16].mxu1 %v928_v12  ;;  %v3116_v12 = vld [vmem:[#allocation7 + $0x8] sm:$0xff] }
 0x13e   :  { %2570 = vmatpush3.bf16.msra.mxu0 %v2746_v14  ;;  %2592 = vmatpush3.bf16.msra.mxu1 %v2747_v16  ;;  %v2767_v14 = vld [vmem:[#allocation8 + $0x1a8] sm:$0xff]   ;;  %v181_v16 = vrot.slane %v3116_v12, %v148_v41  ;;  %v2771_v41 = vld [vmem:[#allocation8 + $0x1b0] sm:$0xff]  }
 0x13f   :  { %2571 = vmatprep.subr.bf16.mxu0 %v2748_v17  ;;  %2593 = vmatprep.subr.bf16.mxu1 %v2749_v19  ;;  %v2769_v17 = vld [vmem:[#allocation8 + $0x1f0] sm:$0xff]   ;;  %v185_v19 = vrot.slane %v3116_v12, %v152_v45  ;;  %v2773_v45 = vld [vmem:[#allocation8 + $0x1f8] sm:$0xff]  }
 0x142   :  { %2572 = vmatpush3.bf16.msra.mxu0 %v2750_v23  ;;  %v670_v31 = vpop.f32.mrb[4].mxu0  ;;  %2594 = vmatpush3.bf16.msra.mxu1 %v2751_v43  ;;  %v713_v36 = vpop.f32.mrb[4].mxu1  ;;  %v189_v23 = vrot.slane %v3116_v12, %v156_v44  ;;  %v193_v43 = vrot.slane %v3116_v12, %v160_v46 }
 0x143   :  { %2573 = vmatprep.subr.bf16.mxu0 %v2752_v24  ;;  %v671_v34 = vadd.f32 %v670_v31, %v165_v25  ;;  %v672_v35 = vpop.f32.mrb[5].mxu0  ;;  %2595 = vmatprep.subr.bf16.mxu1 %v2753_v26  ;;  %v714_v47 = vadd.f32 %v713_v36, %v173_v28  ;;  %v715_v48 = vpop.f32.mrb[5].mxu1  ;;  %v2770_v24 = vld [vmem:[#allocation8 + $0x130] sm:$0xff]   ;;  %v2772_v26 = vld [vmem:[#allocation8 + $0x178] sm:$0xff]  }
 0x144   :  { %v673_v38 = vadd.f32 %v672_v35, %v169_v27  ;;  %v674_v39 = vpop.f32.mrb[6].mxu0  ;;  %v716_v42 = vadd.f32 %v715_v48, %v177_v29  ;;  %v717_v52 = vpop.f32.mrb[6].mxu1 }
 0x145   :  { %v898_v49 = vmax.f32 %v671_v34, 0.0  ;;  %v675_v50 = vadd.f32 %v674_v39, %v165_v25  ;;  %v676_v51 = vpop.f32.mrb[7].mxu0  ;;  %v900_v55 = vmax.f32 %v714_v47, 0.0  ;;  %v718_v57 = vadd.f32 %v717_v52, %v173_v28  ;;  %v719_v58 = vpop.f32.mrb[7].mxu1 }
 0x146   :  { %2574 = vmatpush3.bf16.msra.mxu0 %v2754_v30  ;;  %v899_v54 = vmax.f32 %v673_v38, 0.0  ;;  %v677_v56 = vadd.f32 %v676_v51, %v169_v27  ;;  %2596 = vmatpush3.bf16.msra.mxu1 %v2755_v32  ;;  %v901_v62 = vmax.f32 %v716_v42, 0.0  ;;  %v720_v63 = vadd.f32 %v719_v58, %v177_v29  ;;  %v2776_v51 = vld [vmem:[#allocation8 + $0x240] sm:$0xff]  }
 0x147   :  { %2575 = vmatprep.subr.bf16.mxu0 %v2756_v33  ;;  %v914_v61 = vmax.f32 %v675_v50, 0.0  ;;  %2597 = vmatprep.subr.bf16.mxu1 %v2757_v37  ;;  %v916_v3 = vmax.f32 %v718_v57, 0.0  ;;  %v2774_v37 = vld [vmem:[#allocation8 + $0x138] sm:$0xff]  }
 0x148   :  { %v915_v2 = vmax.f32 %v677_v56, 0.0  ;;  %v917_v5 = vmax.f32 %v720_v63, 0.0  ;;  %v2775_v50 = vld [vmem:[#allocation8 + $0x1b8] sm:$0xff]   ;;  %v2780_v63 = vld [vmem:[#allocation8 + $0x248] sm:$0xff]  }
 0x149   :  { %v3112_v4 = vpack.c.bf16 %v914_v61, %v898_v49  ;;  %v3114_v8 = vpack.c.bf16 %v916_v3, %v900_v55  ;;  %v2782_v3 = vld [vmem:[#allocation8 + $0x208] sm:$0xff]  }
 0x14a   :  { %2576 = vmatpush3.bf16.msra.mxu0 %v2758_v53  ;;  %v931_v7 = vpack.c.bf16 %v915_v2, %v899_v54  ;;  %2598 = vmatpush3.bf16.msra.mxu1 %v2759_v59  ;;  %v933_v11 = vpack.c.bf16 %v917_v5, %v901_v62  ;;  %v2777_v54 = vld [vmem:[#allocation8 + $0x2c0] sm:$0xff]   ;;  %v2781_v2 = vld [vmem:[#allocation8 + $0x2c8] sm:$0xff]  }
 0x14b   :  { %2577 = vmatprep.subr.bf16.mxu0 %v2760_v60  ;;  %2599 = vmatprep.subr.bf16.mxu1 %v2761_v1  ;;  %v2778_v59 = vld [vmem:[#allocation8 + $0x200] sm:$0xff]   ;;  %v2783_v5 = vld [vmem:[#allocation8 + $0x288] sm:$0xff]  }
 0x14c   :  { %2087 = vmatprep.mubr.bf16.mxu0 %v931_v7  ;;  %2128 = vmatprep.mubr.bf16.mxu1 %v933_v11  ;;  %v2779_v62 = vld [vmem:[#allocation8 + $0x280] sm:$0xff]   ;;  %v197_v7 = vrot.slane %v3116_v12, %v164_v18  ;;  %v2786_v11 = vld [vmem:[#allocation8 + $0x210] sm:$0xff]  }
 0x14d   :  { %v2787_v18 = vld [vmem:[#allocation8 + $0x290] sm:$0xff]  }
 0x14e   :  { %2578 = vmatpush3.bf16.msra.mxu0 %v2762_v6  ;;  %2600 = vmatpush3.bf16.msra.mxu1 %v2763_v9  ;;  %v2784_v6 = vld [vmem:[#allocation8 + $0x250] sm:$0xff]  }
 0x14f   :  { %2579 = vmatprep.subr.bf16.mxu0 %v2764_v10  ;;  %2601 = vmatprep.subr.bf16.mxu1 %v2765_v0  ;;  %v2785_v9 = vld [vmem:[#allocation8 + $0x2d0] sm:$0xff]   ;;  %v201_v10 = vrot.slane %v3116_v12, %v168_v20  ;;  %v2789_v20 = vld [vmem:[#allocation8 + $0x2d8] sm:$0xff]  }
 0x152   :  { %2580 = vmatpush3.bf16.msra.mxu0 %v2766_v13  ;;  %v756_v25 = vpop.f32.mrb[8].mxu0  ;;  %2602 = vmatpush3.bf16.msra.mxu1 %v2767_v14  ;;  %v799_v29 = vpop.f32.mrb[8].mxu1  ;;  %v2788_v13 = vld [vmem:[#allocation8 + $0x258] sm:$0xff]  }
 0x153   :  { %2581 = vmatprep.subr.bf16.mxu0 %v2768_v15  ;;  %v757_v27 = vadd.f32 %v756_v25, %v181_v16  ;;  %v758_v28 = vpop.f32.mrb[9].mxu0  ;;  %2603 = vmatprep.subr.bf16.mxu1 %v2769_v17  ;;  %v800_v32 = vadd.f32 %v799_v29, %v189_v23  ;;  %v801_v44 = vpop.f32.mrb[9].mxu1  ;;  %v2790_v25 = vld [vmem:[#allocation8 + $0x218] sm:$0xff]  }
 0x154   :  { %v759_v30 = vadd.f32 %v758_v28, %v185_v19  ;;  %v760_v31 = vpop.f32.mrb[10].mxu0  ;;  %v802_v46 = vadd.f32 %v801_v44, %v193_v43  ;;  %v803_v36 = vpop.f32.mrb[10].mxu1 }
 0x155   :  { %v902_v33 = vmax.f32 %v757_v27, 0.0  ;;  %v761_v34 = vadd.f32 %v760_v31, %v181_v16  ;;  %v762_v35 = vpop.f32.mrb[11].mxu0  ;;  %v904_v39 = vmax.f32 %v800_v32, 0.0  ;;  %v804_v48 = vadd.f32 %v803_v36, %v189_v23  ;;  %v805_v49 = vpop.f32.mrb[11].mxu1 }
 0x156   :  { %2582 = vmatpush3.bf16.msra.mxu0 %v2770_v24  ;;  %v903_v38 = vmax.f32 %v759_v30, 0.0  ;;  %v763_v47 = vadd.f32 %v762_v35, %v185_v19  ;;  %2604 = vmatpush3.bf16.msra.mxu1 %v2771_v41  ;;  %v905_v52 = vmax.f32 %v802_v46, 0.0  ;;  %v806_v53 = vadd.f32 %v805_v49, %v193_v43  ;;  %v2792_v30 = vld [vmem:[#allocation8 + $0x260] sm:$0xff]  }
 0x157   :  { %2583 = vmatprep.subr.bf16.mxu0 %v2772_v26  ;;  %v918_v42 = vmax.f32 %v761_v34, 0.0  ;;  %2605 = vmatprep.subr.bf16.mxu1 %v2773_v45  ;;  %v920_v56 = vmax.f32 %v804_v48, 0.0  ;;  %v2791_v45 = vld [vmem:[#allocation8 + $0x298] sm:$0xff]   ;;  %v2796_v48 = vld [vmem:[#allocation8 + $0x268] sm:$0xff]  }
 0x158   :  { %v919_v55 = vmax.f32 %v763_v47, 0.0  ;;  %v921_v58 = vmax.f32 %v806_v53, 0.0  ;;  %v2795_v47 = vld [vmem:[#allocation8 + $0x2a0] sm:$0xff]   ;;  %v2801_v53 = vld [vmem:[#allocation8 + $0x2f0] sm:$0xff]  }
 0x159   :  { %v3130_v57 = vpack.c.bf16 %v918_v42, %v902_v33  ;;  %v3132_v61 = vpack.c.bf16 %v920_v56, %v904_v39  ;;  %v2793_v33 = vld [vmem:[#allocation8 + $0x2e0] sm:$0xff]   ;;  %v2799_v42 = vld [vmem:[#allocation8 + $0x2a8] sm:$0xff]   ;;  %v2804_v56 = vld [vmem:[#allocation8 + $0x278] sm:$0xff]  }
 0x15a   :  { %2584 = vmatpush3.bf16.msra.mxu0 %v2774_v37  ;;  %v935_v60 = vpack.c.bf16 %v919_v55, %v903_v38  ;;  %2606 = vmatpush3.bf16.msra.mxu1 %v2775_v50  ;;  %v937_v1 = vpack.c.bf16 %v921_v58, %v905_v52  ;;  %v2794_v37 = vld [vmem:[#allocation8 + $0x220] sm:$0xff]   ;;  %v2797_v50 = vld [vmem:[#allocation8 + $0x2e8] sm:$0xff]   ;;  %v2800_v52 = vld [vmem:[#allocation8 + $0x270] sm:$0xff]  }
 0x15b   :  { %2613 = vmatprep.subr.bf16.mxu0 %v2776_v51  ;;  %2635 = vmatprep.subr.bf16.mxu1 %v2777_v54  ;;  %v2798_v51 = vld [vmem:[#allocation8 + $0x228] sm:$0xff]   ;;  %v2802_v54 = vld [vmem:[#allocation8 + $0x230] sm:$0xff]   ;;  %v2805_v58 = vld [vmem:[#allocation8 + $0x2f8] sm:$0xff]  }
 0x15c   :  { %v2803_v55 = vld [vmem:[#allocation8 + $0x2b0] sm:$0xff]  }
 0x15d   :  { %2088 = vmatmul.mubr.bf16.vlgmr.msra.gmra.mrb[20].mxu0 %v3112_v4  ;;  %2129 = vmatmul.mubr.bf16.vlgmr.msra.gmra.mrb[20].mxu1 %v3114_v8  ;;  %v205_v4 = vrot.slane %v3116_v12, %v172_v21  ;;  %v209_v8 = vrot.slane %v3116_v12, %v176_v22 }
 0x15e   :  { %2614 = vmatpush3.bf16.msra.mxu0 %v2778_v59  ;;  %2636 = vmatpush3.bf16.msra.mxu1 %v2779_v62  ;;  %v2806_v59 = vld [vmem:[#allocation8 + $0x238] sm:$0xff]   ;;  %v2808_v62 = vld [vmem:[#allocation8 + $0x340] sm:$0xff]  }
 0x15f   :  { %2615 = vmatprep.subr.bf16.mxu0 %v2780_v63  ;;  %2637 = vmatprep.subr.bf16.mxu1 %v2781_v2  ;;  %v2809_v63 = vld [vmem:[#allocation8 + $0x3c0] sm:$0xff]  }
 0x160   :  { %2169 = vmatprep.mubr.bf16.mxu0 %v935_v60  ;;  %2210 = vmatprep.mubr.bf16.mxu1 %v937_v1  ;;  %v2807_v60 = vld [vmem:[#allocation8 + $0x2b8] sm:$0xff]   ;;  %v2810_v1 = vld [vmem:[#allocation8 + $0x300] sm:$0xff]  }
 0x161   :  { %v2811_v2 = vld [vmem:[#allocation8 + $0x380] sm:$0xff]  }
 0x162   :  { %2616 = vmatpush3.bf16.msra.mxu0 %v2782_v3  ;;  %v842_v0 = vpop.f32.mrb[12].mxu0  ;;  %2638 = vmatpush3.bf16.msra.mxu1 %v2783_v5  ;;  %v885_v16 = vpop.f32.mrb[12].mxu1  ;;  %v2812_v3 = vld [vmem:[#allocation8 + $0x348] sm:$0xff]  }
 0x163   :  { %2617 = vmatprep.subr.bf16.mxu0 %v2784_v6  ;;  %v843_v14 = vadd.f32 %v842_v0, %v197_v7  ;;  %v844_v15 = vpop.f32.mrb[13].mxu0  ;;  %2639 = vmatprep.subr.bf16.mxu1 %v2785_v9  ;;  %v886_v21 = vadd.f32 %v885_v16, %v205_v4  ;;  %v887_v23 = vpop.f32.mrb[13].mxu1  ;;  %v2813_v5 = vld [vmem:[#allocation8 + $0x3c8] sm:$0xff]   ;;  %v2816_v9 = vld [vmem:[#allocation8 + $0x350] sm:$0xff]   ;;  %v2823_v0 = vld [vmem:[#allocation8 + $0x398] sm:$0xff]  }
 0x164   :  { %v845_v17 = vadd.f32 %v844_v15, %v201_v10  ;;  %v846_v19 = vpop.f32.mrb[14].mxu0  ;;  %v888_v22 = vadd.f32 %v887_v23, %v209_v8  ;;  %v889_v12 = vpop.f32.mrb[14].mxu1  ;;  %v2814_v6 = vld [vmem:[#allocation8 + $0x308] sm:$0xff]   ;;  %v2827_v15 = vld [vmem:[#allocation8 + $0x3a0] sm:$0xff]   ;;  %v2833_v23 = vld [vmem:[#allocation8 + $0x3f0] sm:$0xff]  }
 0x165   :  { %v906_v43 = vmax.f32 %v843_v14, 0.0  ;;  %v847_v40 = vadd.f32 %v846_v19, %v197_v7  ;;  %v848_v24 = vpop.f32.mrb[15].mxu0  ;;  %v908_v26 = vmax.f32 %v886_v21, 0.0  ;;  %v890_v28 = vadd.f32 %v889_v12, %v205_v4  ;;  %v891_v29 = vpop.f32.mrb[15].mxu1  ;;  %v2815_v7 = vld [vmem:[#allocation8 + $0x388] sm:$0xff]   ;;  %v2818_v4 = vld [vmem:[#allocation8 + $0x310] sm:$0xff]  }
 0x166   :  { %2618 = vmatpush3.bf16.msra.mxu0 %v2786_v11  ;;  %v907_v41 = vmax.f32 %v845_v17, 0.0  ;;  %v849_v27 = vadd.f32 %v848_v24, %v201_v10  ;;  %2640 = vmatpush3.bf16.msra.mxu1 %v2787_v18  ;;  %v909_v32 = vmax.f32 %v888_v22, 0.0  ;;  %v892_v44 = vadd.f32 %v891_v29, %v209_v8  ;;  %v2817_v10 = vld [vmem:[#allocation8 + $0x3d0] sm:$0xff]   ;;  %v2820_v11 = vld [vmem:[#allocation8 + $0x358] sm:$0xff]   ;;  %v2824_v18 = vld [vmem:[#allocation8 + $0x360] sm:$0xff]  }
 0x167   :  { %2619 = vmatprep.subr.bf16.mxu0 %v2788_v13  ;;  %v922_v31 = vmax.f32 %v847_v40, 0.0  ;;  %2641 = vmatprep.subr.bf16.mxu1 %v2789_v20  ;;  %v924_v35 = vmax.f32 %v890_v28, 0.0  ;;  %v2819_v8 = vld [vmem:[#allocation8 + $0x390] sm:$0xff]   ;;  %v2825_v13 = vld [vmem:[#allocation8 + $0x3e0] sm:$0xff]   ;;  %v2828_v16 = vld [vmem:[#allocation8 + $0x368] sm:$0xff]  }
 0x168   :  { %v923_v34 = vmax.f32 %v849_v27, 0.0  ;;  %v925_v36 = vmax.f32 %v892_v44, 0.0  ;;  %v2826_v14 = vld [vmem:[#allocation8 + $0x320] sm:$0xff]   ;;  %v2829_v20 = vld [vmem:[#allocation8 + $0x3e8] sm:$0xff]   ;;  %v2832_v21 = vld [vmem:[#allocation8 + $0x370] sm:$0xff]  }
 0x169   :  { %v3148_v46 = vpack.c.bf16 %v922_v31, %v906_v43  ;;  %v3150_v39 = vpack.c.bf16 %v924_v35, %v908_v26  ;;  %v2830_v17 = vld [vmem:[#allocation8 + $0x328] sm:$0xff]   ;;  %v2834_v43 = vld [vmem:[#allocation8 + $0x330] sm:$0xff]   ;;  %v2836_v24 = vld [vmem:[#allocation8 + $0x378] sm:$0xff]  }
 0x16a   :  { %2620 = vmatpush3.bf16.msra.mxu0 %v2790_v25  ;;  %v939_v38 = vpack.c.bf16 %v923_v34, %v907_v41  ;;  %2642 = vmatpush3.bf16.msra.mxu1 %v2791_v45  ;;  %v941_v49 = vpack.c.bf16 %v925_v36, %v909_v32  ;;  %v2831_v19 = vld [vmem:[#allocation8 + $0x3a8] sm:$0xff]   ;;  %v2835_v40 = vld [vmem:[#allocation8 + $0x3b0] sm:$0xff]   ;;  %v2837_v22 = vld [vmem:[#allocation8 + $0x3f8] sm:$0xff]  }
 0x16b   :  { %2621 = vmatprep.subr.bf16.mxu0 %v2792_v30  ;;  %2643 = vmatprep.subr.bf16.mxu1 %v2793_v33  ;;  %v2838_v12 = vld [vmem:[#allocation8 + $0x338] sm:$0xff]   ;;  %v2396_v27 = vld [vmem:[%s3178_s4] ss:$0 sm:$0xff]  ;;  %s2968_s4 = smov [#allocation10]  }
 0x16c   :  { %v2839_v25 = vld [vmem:[#allocation8 + $0x3b8] sm:$0xff]   ;;  %s2310_s20 = sshll.u32 %s2968_s4, 4  ;;  %s2311_s20 = int_to_ptr.vmem [resolvable:$true] %s2310_s20 }
 0x16d   :  { %s2928_s21 = scalar_lea.vmem %s2311_s20, 256  ;;  %p2933_p5 = scmp.lt.s32.totalorder %s2311_s20, %s2311_s20 }
 0x16e   :  { %2622 = vmatpush3.bf16.msra.mxu0 %v2794_v37  ;;  %2644 = vmatpush3.bf16.msra.mxu1 %v2795_v47  ;;  %p2929_p4 = scmp.ne.s32.totalorder %s2311_s20, %s2928_s21  ;;  %p2934_p6 = scmp.lt.s32.totalorder %s2928_s21, %s2928_s21 }
 0x16f   :  { %2623 = vmatprep.subr.bf16.mxu0 %v2796_v48  ;;  %2645 = vmatprep.subr.bf16.mxu1 %v2797_v50 }
 0x170   :  { %p2935_p7 = por %p2934_p6, %p2933_p5 }
 0x172   :  { %2624 = vmatpush3.bf16.msra.mxu0 %v2798_v51  ;;  %2646 = vmatpush3.bf16.msra.mxu1 %v2799_v42  ;;  %p2936_p8 = pnand %p2935_p7, %p2929_p4 }
 0x173   :  { %2625 = vmatprep.subr.bf16.mxu0 %v2800_v52  ;;  %2647 = vmatprep.subr.bf16.mxu1 %v2801_v53 }
 0x176   :  { %2626 = vmatpush3.bf16.msra.mxu0 %v2802_v54  ;;  %2648 = vmatpush3.bf16.msra.mxu1 %v2803_v55 }
 0x177   :  { %2627 = vmatprep.subr.bf16.mxu0 %v2804_v56  ;;  %2649 = vmatprep.subr.bf16.mxu1 %v2805_v58 }
 0x17a   :  { %2628 = vmatpush3.bf16.msra.mxu0 %v2806_v59  ;;  %2650 = vmatpush3.bf16.msra.mxu1 %v2807_v60 }
 0x17b   :  { %2657 = vmatprep.subr.bf16.mxu0 %v2808_v62  ;;  %2679 = vmatprep.subr.bf16.mxu1 %v2809_v63 }
 0x17d   :  { %2170 = vmatmul.mubr.bf16.vlgmr.msra.gmra.mrb[24].mxu0 %v3130_v57  ;;  %2211 = vmatmul.mubr.bf16.vlgmr.msra.gmra.mrb[24].mxu1 %v3132_v61  ;;  %v2821_v57 = vld [vmem:[#allocation8 + $0x3d8] sm:$0xff]  }
 0x17e   :  { %2658 = vmatpush3.bf16.msra.mxu0 %v2810_v1  ;;  %2680 = vmatpush3.bf16.msra.mxu1 %v2811_v2  ;;  %v2822_v61 = vld [vmem:[#allocation8 + $0x318] sm:$0xff]  }
 0x17f   :  { %2659 = vmatprep.subr.bf16.mxu0 %v2812_v3  ;;  %2681 = vmatprep.subr.bf16.mxu1 %v2813_v5 }
 0x180   :  { %2251 = vmatprep.mubr.bf16.mxu0 %v939_v38  ;;  %2292 = vmatprep.mubr.bf16.mxu1 %v941_v49 }
 0x182   :  { %2660 = vmatpush3.bf16.msra.mxu0 %v2814_v6  ;;  %2682 = vmatpush3.bf16.msra.mxu1 %v2815_v7 }
 0x183   :  { %2661 = vmatprep.subr.bf16.mxu0 %v2816_v9  ;;  %2683 = vmatprep.subr.bf16.mxu1 %v2817_v10 }
 0x186   :  { %2662 = vmatpush3.bf16.msra.mxu0 %v2818_v4  ;;  %2684 = vmatpush3.bf16.msra.mxu1 %v2819_v8 }
 0x187   :  { %2663 = vmatprep.subr.bf16.mxu0 %v2820_v11  ;;  %2685 = vmatprep.subr.bf16.mxu1 %v2821_v57 }
 0x18a   :  { %2664 = vmatpush3.bf16.msra.mxu0 %v2822_v61  ;;  %2686 = vmatpush3.bf16.msra.mxu1 %v2823_v0 }
 0x18b   :  { %2665 = vmatprep.subr.bf16.mxu0 %v2824_v18  ;;  %2687 = vmatprep.subr.bf16.mxu1 %v2825_v13 }
 0x18e   :  { %2666 = vmatpush3.bf16.msra.mxu0 %v2826_v14  ;;  %2688 = vmatpush3.bf16.msra.mxu1 %v2827_v15 }
 0x18f   :  { %2667 = vmatprep.subr.bf16.mxu0 %v2828_v16  ;;  %2689 = vmatprep.subr.bf16.mxu1 %v2829_v20 }
 0x192   :  { %2668 = vmatpush3.bf16.msra.mxu0 %v2830_v17  ;;  %2690 = vmatpush3.bf16.msra.mxu1 %v2831_v19 }
 0x193   :  { %2669 = vmatprep.subr.bf16.mxu0 %v2832_v21  ;;  %2691 = vmatprep.subr.bf16.mxu1 %v2833_v23 }
 0x196   :  { %2670 = vmatpush3.bf16.msra.mxu0 %v2834_v43  ;;  %2692 = vmatpush3.bf16.msra.mxu1 %v2835_v40 }
 0x197   :  { %2671 = vmatprep.subr.bf16.mxu0 %v2836_v24  ;;  %2693 = vmatprep.subr.bf16.mxu1 %v2837_v22 }
 0x19a   :  { %2672 = vmatpush3.bf16.msra.mxu0 %v2838_v12  ;;  %2694 = vmatpush3.bf16.msra.mxu1 %v2839_v25 }
 0x19d   :  { %2252 = vmatmul.mubr.bf16.vlgmr.msra.gmra.mrb[28].mxu0 %v3148_v46  ;;  %2293 = vmatmul.mubr.bf16.vlgmr.msra.gmra.mrb[28].mxu1 %v3150_v39 }
 0x210   :  { %v2541_v41 = vpop.f32.mrb[16].mxu0  ;;  %v2563_v26 = vpop.f32.mrb[16].mxu1 }
 0x211   :  { %v2542_v28 = vpop.f32.mrb[17].mxu0  ;;  %v2564_v45 = vpop.f32.mrb[17].mxu1 }
 0x212   :  { %v2543_v29 = vadd.f32 %v2542_v28, %v2541_v41  ;;  %v2544_v30 = vpop.f32.mrb[18].mxu0  ;;  %v2565_v31 = vadd.f32 %v2564_v45, %v2563_v26  ;;  %v2566_v32 = vpop.f32.mrb[18].mxu1 }
 0x213   :  { %v2545_v44 = vpop.f32.mrb[19].mxu0  ;;  %v2567_v35 = vpop.f32.mrb[19].mxu1 }
 0x214   :  { %v2008_v33 = vadd.f32 %v2543_v29, %v2396_v27  ;;  %v2546_v34 = vadd.f32 %v2545_v44, %v2544_v30  ;;  %v2568_v36 = vadd.f32 %v2567_v35, %v2566_v32 }
 0x216   :  { %v2049_v46 = vadd.f32 %v2565_v31, %v2008_v33  ;;  %v2011_v37 = vadd.f32 %v2546_v34, %v2396_v27 }
 0x218   :  { %v2052_v38 = vadd.f32 %v2568_v36, %v2011_v37 }
 0x230   :  { %v2585_v39 = vpop.f32.mrb[20].mxu0  ;;  %v2607_v47 = vpop.f32.mrb[20].mxu1 }
 0x231   :  { %v2586_v48 = vpop.f32.mrb[21].mxu0  ;;  %v2608_v50 = vpop.f32.mrb[21].mxu1 }
 0x232   :  { %v2587_v49 = vadd.f32 %v2586_v48, %v2585_v39  ;;  %v2588_v51 = vpop.f32.mrb[22].mxu0  ;;  %v2609_v42 = vadd.f32 %v2608_v50, %v2607_v47  ;;  %v2610_v52 = vpop.f32.mrb[22].mxu1 }
 0x233   :  { %v2589_v53 = vpop.f32.mrb[23].mxu0  ;;  %v2611_v56 = vpop.f32.mrb[23].mxu1 }
 0x234   :  { %v2090_v54 = vadd.f32 %v2587_v49, %v2049_v46  ;;  %v2590_v55 = vadd.f32 %v2589_v53, %v2588_v51  ;;  %v2612_v58 = vadd.f32 %v2611_v56, %v2610_v52 }
 0x236   :  { %v2131_v59 = vadd.f32 %v2609_v42, %v2090_v54  ;;  %v2093_v60 = vadd.f32 %v2590_v55, %v2052_v38 }
 0x238   :  { %v2134_v62 = vadd.f32 %v2612_v58, %v2093_v60 }
 0x250   :  { %v2629_v63 = vpop.f32.mrb[24].mxu0  ;;  %v2651_v1 = vpop.f32.mrb[24].mxu1 }
 0x251   :  { %v2630_v2 = vpop.f32.mrb[25].mxu0  ;;  %v2652_v5 = vpop.f32.mrb[25].mxu1 }
 0x252   :  { %v2631_v3 = vadd.f32 %v2630_v2, %v2629_v63  ;;  %v2632_v6 = vpop.f32.mrb[26].mxu0  ;;  %v2653_v7 = vadd.f32 %v2652_v5, %v2651_v1  ;;  %v2654_v9 = vpop.f32.mrb[26].mxu1 }
 0x253   :  { %v2633_v10 = vpop.f32.mrb[27].mxu0  ;;  %v2655_v11 = vpop.f32.mrb[27].mxu1 }
 0x254   :  { %v2172_v4 = vadd.f32 %v2631_v3, %v2131_v59  ;;  %v2634_v8 = vadd.f32 %v2633_v10, %v2632_v6  ;;  %v2656_v57 = vadd.f32 %v2655_v11, %v2654_v9 }
 0x256   :  { %v2213_v61 = vadd.f32 %v2653_v7, %v2172_v4  ;;  %v2175_v0 = vadd.f32 %v2634_v8, %v2134_v62 }
 0x258   :  { %v2216_v18 = vadd.f32 %v2656_v57, %v2175_v0 }
 0x270   :  { %v2673_v13 = vpop.f32.mrb[28].mxu0  ;;  %v2695_v14 = vpop.f32.mrb[28].mxu1 }
 0x271   :  { %v2674_v15 = vpop.f32.mrb[29].mxu0  ;;  %v2696_v20 = vpop.f32.mrb[29].mxu1 }
 0x272   :  { %v2675_v16 = vadd.f32 %v2674_v15, %v2673_v13  ;;  %v2676_v17 = vpop.f32.mrb[30].mxu0  ;;  %v2697_v19 = vadd.f32 %v2696_v20, %v2695_v14  ;;  %v2698_v21 = vpop.f32.mrb[30].mxu1 }
 0x273   :  { %v2677_v23 = vpop.f32.mrb[31].mxu0  ;;  %v2699_v24 = vpop.f32.mrb[31].mxu1 }
 0x274   :  { %v2254_v43 = vadd.f32 %v2675_v16, %v2213_v61  ;;  %v2678_v40 = vadd.f32 %v2677_v23, %v2676_v17  ;;  %v2700_v22 = vadd.f32 %v2699_v24, %v2698_v21 }
 0x276   :  { %v2295_v12 = vadd.f32 %v2697_v19, %v2254_v43  ;;  %v2257_v25 = vadd.f32 %v2678_v40, %v2216_v18 }
 0x278   :  { %v2301_v41 = vmax.f32 %v2295_v12, 0.0  ;;  %v2298_v26 = vadd.f32 %v2700_v22, %v2257_v25 }
 0x27a   :  { %2303 = vst [vmem:[#allocation10] sm:$0xff] %v2301_v41  ;;  %v2302_v27 = vmax.f32 %v2298_v26, 0.0 }
 0x27c   :  { %2304 = vst [vmem:[#allocation10 + $0x8] sm:$0xff] %v2302_v27 }
 0x27d   :  { %2939 = shalt.err (!%p2936_p8)
}
 0x27e   :  { %s2940_s24 = scalar_lea.hbm %s3179_s5, 256 }
 0x27f   :  { %p2941_p9 = scmp.ne.s32.totalorder %s3179_s5, %s2940_s24  ;;  %p2944_p10 = scmp.lt.u32.totalorder %s2940_s24, %s3179_s5 }
 0x281   :  { %p2946_p11 = pnand %p2944_p10, %p2941_p9 }
 0x283   :  { %2949 = shalt.err (!%p2946_p11)
}
 0x284   :  { %2316 = dma.vmem_to_hbm [thread:$0]  %s2311_s20, 256, %s3179_s5, [#allocation4], %s2962_s1, %s2962_s1, %s2963_s17  }
 0x285   :  { %2956 = dma.done.wait [#allocation4], 256  }
 0x286   :  { %2957 = vsyncadd [#allocation4], 4294967040 }
 0x287   :  { %2320 = vsyncpa [#allocation3], 1 }
 0x288   :  { %2321 = vsyncpa [#allocation6], 1 }
 0x289   :  { %2322 = vsyncpa [#allocation9], 1 }
 0x28a   :  { %2323 = vsyncpa [#allocation4], 1 }

</bundles_post_ra>
